<compile_context>
chip_gen: v7x
topology: tpu7x:2x2x1
jax: 0.10.0
libtpu: 0.0.40
codegen_flags: <defaults>
</compile_context>

<pallas_src>
import math
import numpy as np
import jax
import jax.numpy as jnp
from jax.experimental import pallas as pl
from jax.experimental.pallas import tpu as pltpu

# Module hyper-parameters (defaults of MarginLoss.__init__)
S_SCALE = 10.0
M_MARGIN = 0.5
COS_M = math.cos(M_MARGIN)
SIN_M = math.sin(M_MARGIN)
TH = math.cos(math.pi - M_MARGIN)
MM = math.sin(math.pi - M_MARGIN) * M_MARGIN
NEG_INF = -1e30
EASY_MARGIN = False


def _margin_loss_kernel(nrows_ref, ncols_ref, e1_ref, e2_ref, lab_ref, out_ref):
    """One grid step: per-batch margin loss for a (Bt,) slab of batches.

    Block shapes:
      nrows_ref / ncols_ref : (Bt, 1, 1) int32
      e1_ref                : (Bt, N, D) float
      e2_ref                : (Bt, M, D) float
      lab_ref               : (Bt, N, M) 0/1
      out_ref               : (Bt, 1, 1) float32   (per-batch loss)
    """
    e1 = e1_ref[...].astype(jnp.float32)
    e2 = e2_ref[...].astype(jnp.float32)
    lab = lab_ref[...].astype(jnp.float32)

    # F.normalize(x, dim=-1) == x * rsqrt(max(sum(x^2), eps^2)).
    # rsqrt runs on the EUP slot instead of sqrt + full-width divide on VALU.
    inv1 = jax.lax.rsqrt(jnp.maximum(jnp.sum(e1 * e1, axis=-1, keepdims=True), 1e-24))
    inv2 = jax.lax.rsqrt(jnp.maximum(jnp.sum(e2 * e2, axis=-1, keepdims=True), 1e-24))
    e1n = e1 * inv1
    e2n = e2 * inv2

    # Batched NT contraction on the MXU -- no explicit transpose of e2n.
    cosine = jnp.einsum(
        "bnd,bmd->bnm", e1n, e2n,
        preferred_element_type=jnp.float32,
        precision=jax.lax.Precision.HIGHEST)        # (Bt, N, M)

    sine = jnp.sqrt(jnp.clip(1.0 - cosine * cosine, 0.0, 1.0))
    phi = cosine * COS_M - sine * SIN_M
    if EASY_MARGIN:
        phi = jnp.where(cosine > 0.0, phi, cosine)
    else:
        phi = jnp.where(cosine > TH, phi, cosine - MM)

    Bt, N, Mdim = lab.shape
    row_ids = jax.lax.broadcasted_iota(jnp.int32, (Bt, N, Mdim), 1)
    col_ids = jax.lax.broadcasted_iota(jnp.int32, (Bt, N, Mdim), 2)
    valid = (row_ids < nrows_ref[...]) & (col_ids < ncols_ref[...])
    lab_v = jnp.where(valid, lab, 0.0)

    # Rows / columns with at least one match inside the valid region
    # (stands in for the torch.nonzero row/col selection).
    row_has = jnp.sum(lab_v, axis=2, keepdims=True) > 0.0     # (Bt, N, 1)
    col_has = jnp.sum(lab_v, axis=1, keepdims=True) > 0.0     # (Bt, 1, M)

    # (phi*l + (1-l)*cos) * s, rewritten with one fewer multiply (l in {0,1}).
    scale = (cosine + lab_v * (phi - cosine)) * S_SCALE

    # Cross-entropy over the matched columns, per matched row.
    masked = jnp.where(col_has, scale, NEG_INF)
    row_max = jnp.max(masked, axis=2, keepdims=True)
    lse = row_max + jnp.log(jnp.sum(jnp.exp(masked - row_max), axis=2, keepdims=True))
    target = jnp.sum(lab_v * scale, axis=2, keepdims=True)

    row_has_f = row_has.astype(jnp.float32)
    per_row = (lse - target) * row_has_f                      # (Bt, N, 1)
    cnt = jnp.sum(row_has_f, axis=1, keepdims=True)           # (Bt, 1, 1)
    tot = jnp.sum(per_row, axis=1, keepdims=True)             # (Bt, 1, 1)
    out_ref[...] = jnp.where(cnt > 0.0, tot / jnp.maximum(cnt, 1.0), 0.0)


def _round_up(x, m):
    return (x + m - 1) // m * m


def margin_loss(emd1, emd2, label, nrows, ncols, *, block_b=None):
    B, N, D = emd1.shape
    _, Mdim, _ = emd2.shape
    assert label.shape == (B, N, Mdim)

    nrows = jnp.asarray(nrows, jnp.int32).reshape(B, 1, 1)
    ncols = jnp.asarray(ncols, jnp.int32).reshape(B, 1, 1)

    # VMEM estimate uses the internal (8,128)-padded layout dims; no HBM padding.
    emd_b = jnp.dtype(emd1.dtype).itemsize
    lab_b = jnp.dtype(label.dtype).itemsize
    n_v, m_v, d_v = _round_up(N, 8), _round_up(Mdim, 128), _round_up(D, 128)

    def vmem_est(bt):
        ins = bt * (n_v * d_v * emd_b + m_v * d_v * emd_b + n_v * m_v * lab_b)
        return 2 * ins + 8 * bt * n_v * m_v * 4   # dbl-buffered inputs + ~8 f32 temps

    if block_b is None:
        # Largest batch tile that divides B, leaves >=2 grid steps (so the
        # "parallel" axis can use both v7x TensorCores) and fits a conservative
        # VMEM budget.
        Bt = 1
        for bt in range(1, min(B, 8) + 1):
            if B % bt:
                continue
            if B > 1 and B // bt < 2:
                continue
            if vmem_est(bt) <= 32 * 1024 * 1024:
                Bt = bt
    else:
        Bt = block_b
    assert B % Bt == 0
    grid = (B // Bt,)

    # TODO(synk): for very large N*M that do not fit VMEM even at Bt=1, add a
    # second grid axis tiling N (needs the column-match mask precomputed once,
    # since col_has is a reduction over all rows).

    cp_kwargs = dict(dimension_semantics=("parallel",))
    est = vmem_est(Bt)
    if est > 12 * 1024 * 1024:
        cp_kwargs["vmem_limit_bytes"] = int(min(64 * 1024 * 1024, 2 * est))

    per_batch = pl.pallas_call(
        _margin_loss_kernel,
        out_shape=jax.ShapeDtypeStruct((B, 1, 1), jnp.float32),
        grid=grid,
        in_specs=[
            pl.BlockSpec((Bt, 1, 1), lambda b: (b, 0, 0)),    # nrows
            pl.BlockSpec((Bt, 1, 1), lambda b: (b, 0, 0)),    # ncols
            pl.BlockSpec((Bt, N, D), lambda b: (b, 0, 0)),    # emd1 (full N, D)
            pl.BlockSpec((Bt, Mdim, D), lambda b: (b, 0, 0)), # emd2 (full M, D)
            pl.BlockSpec((Bt, N, Mdim), lambda b: (b, 0, 0)), # label (full N, M)
        ],
        out_specs=pl.BlockSpec((Bt, 1, 1), lambda b: (b, 0, 0)),
        compiler_params=pltpu.CompilerParams(**cp_kwargs),
    )(nrows, ncols, emd1, emd2, label)

    # Mean over batches (empty batches contribute 0 but still count), matching
    # `loss / batch_num` in the PyTorch module.
    return jnp.sum(per_batch) / B


def margin_loss_reference(emd1, emd2, label, nrows, ncols):
    """Pure-JAX reference mirroring the PyTorch forward semantics."""
    def normalize(x):
        n = jnp.sqrt(jnp.sum(x * x, axis=-1, keepdims=True))
        return x / jnp.maximum(n, 1e-12)

    c = jnp.einsum('bnd,bmd->bnm', normalize(emd1), normalize(emd2),
                   precision=jax.lax.Precision.HIGHEST)
    sine = jnp.sqrt(jnp.clip(1.0 - c * c, 0.0, 1.0))
    phi = jnp.where(c > TH, c * COS_M - sine * SIN_M, c - MM)

    B, N, Mdim = label.shape
    total = jnp.float32(0.0)
    rid = np.arange(N)[:, None]
    cid = np.arange(Mdim)[None, :]
    for b in range(B):
        valid = (rid < int(nrows[b])) & (cid < int(ncols[b]))
        lab = label[b] * valid.astype(np.float32)
        row_has = jnp.sum(lab, axis=1) > 0
        col_has = jnp.sum(lab, axis=0) > 0
        scale = (phi[b] * lab + (1.0 - lab) * c[b]) * S_SCALE
        masked = jnp.where(col_has[None, :], scale, NEG_INF)
        lse = jax.scipy.special.logsumexp(masked, axis=1)
        tgt = jnp.sum(lab * scale, axis=1)
        per = (lse - tgt) * row_has.astype(jnp.float32)
        cnt = jnp.sum(row_has.astype(jnp.float32))
        total = total + jnp.where(cnt > 0, jnp.sum(per) / jnp.maximum(cnt, 1.0), 0.0)
    return total / B


if __name__ == "__main__":
    B, N, Mdim, D = 2, 8, 8, 32

    key = jax.random.PRNGKey(0)
    k1, k2 = jax.random.split(key)
    emd1 = jax.random.normal(k1, (B, N, D), dtype=jnp.float32)
    emd2 = jax.random.normal(k2, (B, Mdim, D), dtype=jnp.float32)

    # Deterministic one-to-one correspondence labels.
    label_np = np.zeros((B, N, Mdim), dtype=np.float32)
    # batch 0: full 8x8 region, identity-with-a-shift matching
    for i in range(8):
        label_np[0, i, (i + 3) % 8] = 1.0
    # batch 1: valid region is 6x6, a fixed permutation inside it
    perm = [2, 0, 4, 1, 5, 3]
    for i in range(6):
        label_np[1, i, perm[i]] = 1.0
    label = jnp.asarray(label_np)

    nrows = jnp.asarray([8, 6], dtype=jnp.int32)
    ncols = jnp.asarray([8, 6], dtype=jnp.int32)

    loss = margin_loss(emd1, emd2, label, nrows, ncols)
    loss = jax.block_until_ready(loss)

    ref = margin_loss_reference(emd1, emd2, label, np.asarray(nrows), np.asarray(ncols))
    np.testing.assert_allclose(np.asarray(loss), np.asarray(ref), rtol=1e-4, atol=1e-4)

    print("KERNEL_OK")
</pallas_src>

<mosaic_0001>
module attributes {stable_mosaic.version = 11 : i64} {
  func.func @_margin_loss_kernel(%arg0: i32, %arg1: memref<1x1x1xi32, #tpu.memory_space<vmem>>, %arg2: memref<1x1x1xi32, #tpu.memory_space<vmem>>, %arg3: memref<1x8x32xf32, #tpu.memory_space<vmem>>, %arg4: memref<1x8x32xf32, #tpu.memory_space<vmem>>, %arg5: memref<1x8x8xf32, #tpu.memory_space<vmem>>, %arg6: memref<1x1x1xf32, #tpu.memory_space<vmem>>) attributes {dimension_semantics = [#tpu.dimension_semantics<parallel>], iteration_bounds = array<i64: 2>, scalar_prefetch = 0 : i64, scratch_operands = 0 : i64, tpu.core_type = #tpu.core_type<tc>, window_params = [{transform_indices = @transform_0, window_bounds = array<i64: 1, 1, 1>}, {transform_indices = @transform_1, window_bounds = array<i64: 1, 1, 1>}, {transform_indices = @transform_2, window_bounds = array<i64: 1, 8, 32>}, {transform_indices = @transform_3, window_bounds = array<i64: 1, 8, 32>}, {transform_indices = @transform_4, window_bounds = array<i64: 1, 8, 8>}, {transform_indices = @transform_5, window_bounds = array<i64: 1, 1, 1>}]} {
    %c0 = arith.constant 0 : index
    %c0_0 = arith.constant 0 : index
    %c0_1 = arith.constant 0 : index
    %0 = vector.load %arg3[%c0, %c0_0, %c0_1] : memref<1x8x32xf32, #tpu.memory_space<vmem>>, vector<1x8x32xf32>
    %c0_2 = arith.constant 0 : index
    %c0_3 = arith.constant 0 : index
    %c0_4 = arith.constant 0 : index
    %1 = vector.load %arg4[%c0_2, %c0_3, %c0_4] : memref<1x8x32xf32, #tpu.memory_space<vmem>>, vector<1x8x32xf32>
    %c0_5 = arith.constant 0 : index
    %c0_6 = arith.constant 0 : index
    %c0_7 = arith.constant 0 : index
    %2 = vector.load %arg5[%c0_5, %c0_6, %c0_7] : memref<1x8x8xf32, #tpu.memory_space<vmem>>, vector<1x8x8xf32>
    %3 = arith.mulf %0, %0 : vector<1x8x32xf32>
    %cst = arith.constant dense<0.000000e+00> : vector<1x8xf32>
    %4 = vector.multi_reduction <add>, %3, %cst [2] : vector<1x8x32xf32> to vector<1x8xf32>
    %5 = vector.shape_cast %4 : vector<1x8xf32> to vector<1x8x1xf32>
    %cst_8 = arith.constant 1.000000e-24 : f32
    %6 = vector.broadcast %cst_8 : f32 to vector<1x8x1xf32>
    %7 = arith.maximumf %5, %6 : vector<1x8x1xf32>
    %8 = math.rsqrt %7 : vector<1x8x1xf32>
    %9 = arith.mulf %1, %1 : vector<1x8x32xf32>
    %cst_9 = arith.constant dense<0.000000e+00> : vector<1x8xf32>
    %10 = vector.multi_reduction <add>, %9, %cst_9 [2] : vector<1x8x32xf32> to vector<1x8xf32>
    %11 = vector.shape_cast %10 : vector<1x8xf32> to vector<1x8x1xf32>
    %cst_10 = arith.constant 1.000000e-24 : f32
    %12 = vector.broadcast %cst_10 : f32 to vector<1x8x1xf32>
    %13 = arith.maximumf %11, %12 : vector<1x8x1xf32>
    %14 = math.rsqrt %13 : vector<1x8x1xf32>
    %15 = vector.broadcast %8 : vector<1x8x1xf32> to vector<1x8x32xf32>
    %16 = arith.mulf %0, %15 : vector<1x8x32xf32>
    %17 = vector.broadcast %14 : vector<1x8x1xf32> to vector<1x8x32xf32>
    %18 = arith.mulf %1, %17 : vector<1x8x32xf32>
    "tpu.trace_start"() <{level = 10 : i32, message = "bnd,bmd->bnm"}> : () -> ()
    %cst_11 = arith.constant dense<0.000000e+00> : vector<1x8x8xf32>
    %19 = tpu.matmul %16, %18, %cst_11 {dimension_numbers = #tpu.dot_dimension_numbers<[2], [2], [1], [1], [0, 0, 0, 1, 1, 1], [0], [0]>, precision = #tpu.contract_precision<fp32>} : vector<1x8x32xf32>, vector<1x8x32xf32>, vector<1x8x8xf32> -> vector<1x8x8xf32>
    "tpu.trace_stop"() : () -> ()
    %20 = arith.mulf %19, %19 : vector<1x8x8xf32>
    %cst_12 = arith.constant 1.000000e+00 : f32
    %21 = vector.broadcast %cst_12 : f32 to vector<1x8x8xf32>
    %22 = arith.subf %21, %20 : vector<1x8x8xf32>
    %cst_13 = arith.constant 0.000000e+00 : f32
    %cst_14 = arith.constant 1.000000e+00 : f32
    %23 = vector.broadcast %cst_13 : f32 to vector<1x8x8xf32>
    %24 = arith.maximumf %23, %22 : vector<1x8x8xf32>
    %25 = vector.broadcast %cst_14 : f32 to vector<1x8x8xf32>
    %26 = arith.minimumf %25, %24 : vector<1x8x8xf32>
    %27 = math.sqrt %26 : vector<1x8x8xf32>
    %cst_15 = arith.constant 0.87758255 : f32
    %28 = vector.broadcast %cst_15 : f32 to vector<1x8x8xf32>
    %29 = arith.mulf %19, %28 : vector<1x8x8xf32>
    %cst_16 = arith.constant 0.47942555 : f32
    %30 = vector.broadcast %cst_16 : f32 to vector<1x8x8xf32>
    %31 = arith.mulf %27, %30 : vector<1x8x8xf32>
    %32 = arith.subf %29, %31 : vector<1x8x8xf32>
    %cst_17 = arith.constant -0.87758255 : f32
    %33 = vector.broadcast %cst_17 : f32 to vector<1x8x8xf32>
    %34 = arith.cmpf ogt, %19, %33 : vector<1x8x8xf32>
    %cst_18 = arith.constant 0.239712775 : f32
    %35 = vector.broadcast %cst_18 : f32 to vector<1x8x8xf32>
    %36 = arith.subf %19, %35 : vector<1x8x8xf32>
    %37 = arith.select %34, %32, %36 : vector<1x8x8xi1>, vector<1x8x8xf32>
    %38 = tpu.iota {dimensions = array<i32: 1>} : vector<1x8x8xi32>
    %39 = tpu.iota {dimensions = array<i32: 2>} : vector<1x8x8xi32>
    %c0_19 = arith.constant 0 : index
    %c0_20 = arith.constant 0 : index
    %c0_21 = arith.constant 0 : index
    %40 = vector.load %arg1[%c0_19, %c0_20, %c0_21] : memref<1x1x1xi32, #tpu.memory_space<vmem>>, vector<1x1x1xi32>
    %41 = vector.broadcast %40 : vector<1x1x1xi32> to vector<1x8x8xi32>
    %42 = arith.cmpi slt, %38, %41 : vector<1x8x8xi32>
    %c0_22 = arith.constant 0 : index
    %c0_23 = arith.constant 0 : index
    %c0_24 = arith.constant 0 : index
    %43 = vector.load %arg2[%c0_22, %c0_23, %c0_24] : memref<1x1x1xi32, #tpu.memory_space<vmem>>, vector<1x1x1xi32>
    %44 = vector.broadcast %43 : vector<1x1x1xi32> to vector<1x8x8xi32>
    %45 = arith.cmpi slt, %39, %44 : vector<1x8x8xi32>
    %46 = arith.andi %42, %45 : vector<1x8x8xi1>
    %cst_25 = arith.constant 0.000000e+00 : f32
    %47 = vector.broadcast %cst_25 : f32 to vector<1x8x8xf32>
    %48 = arith.select %46, %2, %47 : vector<1x8x8xi1>, vector<1x8x8xf32>
    %cst_26 = arith.constant dense<0.000000e+00> : vector<1x8xf32>
    %49 = vector.multi_reduction <add>, %48, %cst_26 [2] : vector<1x8x8xf32> to vector<1x8xf32>
    %50 = vector.shape_cast %49 : vector<1x8xf32> to vector<1x8x1xf32>
    %cst_27 = arith.constant 0.000000e+00 : f32
    %51 = vector.broadcast %cst_27 : f32 to vector<1x8x1xf32>
    %52 = arith.cmpf ogt, %50, %51 : vector<1x8x1xf32>
    %cst_28 = arith.constant dense<0.000000e+00> : vector<1x8xf32>
    %53 = vector.multi_reduction <add>, %48, %cst_28 [1] : vector<1x8x8xf32> to vector<1x8xf32>
    %54 = vector.shape_cast %53 : vector<1x8xf32> to vector<1x1x8xf32>
    %cst_29 = arith.constant 0.000000e+00 : f32
    %55 = vector.broadcast %cst_29 : f32 to vector<1x1x8xf32>
    %56 = arith.cmpf ogt, %54, %55 : vector<1x1x8xf32>
    %57 = arith.subf %37, %19 : vector<1x8x8xf32>
    %58 = arith.mulf %48, %57 : vector<1x8x8xf32>
    %59 = arith.addf %19, %58 : vector<1x8x8xf32>
    %cst_30 = arith.constant 1.000000e+01 : f32
    %60 = vector.broadcast %cst_30 : f32 to vector<1x8x8xf32>
    %61 = arith.mulf %59, %60 : vector<1x8x8xf32>
    %cst_31 = arith.constant -1.000000e+30 : f32
    %62 = vector.shape_cast %56 : vector<1x1x8xi1> to vector<1x1x8xi1>
    %63 = vector.broadcast %62 : vector<1x1x8xi1> to vector<1x8x8xi1>
    %64 = vector.broadcast %cst_31 : f32 to vector<1x8x8xf32>
    %65 = arith.select %63, %61, %64 : vector<1x8x8xi1>, vector<1x8x8xf32>
    %cst_32 = arith.constant dense<0xFF800000> : vector<1x8xf32>
    %66 = vector.multi_reduction <maximumf>, %65, %cst_32 [2] : vector<1x8x8xf32> to vector<1x8xf32>
    %67 = vector.shape_cast %66 : vector<1x8xf32> to vector<1x8x1xf32>
    %68 = vector.broadcast %67 : vector<1x8x1xf32> to vector<1x8x8xf32>
    %69 = arith.subf %65, %68 : vector<1x8x8xf32>
    %70 = math.exp %69 : vector<1x8x8xf32>
    %cst_33 = arith.constant dense<0.000000e+00> : vector<1x8xf32>
    %71 = vector.multi_reduction <add>, %70, %cst_33 [2] : vector<1x8x8xf32> to vector<1x8xf32>
    %72 = vector.shape_cast %71 : vector<1x8xf32> to vector<1x8x1xf32>
    %73 = math.log %72 : vector<1x8x1xf32>
    %74 = arith.addf %67, %73 : vector<1x8x1xf32>
    %75 = arith.mulf %48, %61 : vector<1x8x8xf32>
    %cst_34 = arith.constant dense<0.000000e+00> : vector<1x8xf32>
    %76 = vector.multi_reduction <add>, %75, %cst_34 [2] : vector<1x8x8xf32> to vector<1x8xf32>
    %77 = vector.shape_cast %76 : vector<1x8xf32> to vector<1x8x1xf32>
    %78 = arith.extui %52 : vector<1x8x1xi1> to vector<1x8x1xi32>
    %79 = arith.sitofp %78 : vector<1x8x1xi32> to vector<1x8x1xf32>
    %80 = arith.subf %74, %77 : vector<1x8x1xf32>
    %81 = arith.mulf %80, %79 : vector<1x8x1xf32>
    %cst_35 = arith.constant dense<0.000000e+00> : vector<1x1xf32>
    %82 = vector.multi_reduction <add>, %79, %cst_35 [1] : vector<1x8x1xf32> to vector<1x1xf32>
    %83 = vector.shape_cast %82 : vector<1x1xf32> to vector<1x1x1xf32>
    %cst_36 = arith.constant dense<0.000000e+00> : vector<1x1xf32>
    %84 = vector.multi_reduction <add>, %81, %cst_36 [1] : vector<1x8x1xf32> to vector<1x1xf32>
    %85 = vector.shape_cast %84 : vector<1x1xf32> to vector<1x1x1xf32>
    %cst_37 = arith.constant 0.000000e+00 : f32
    %86 = vector.broadcast %cst_37 : f32 to vector<1x1x1xf32>
    %87 = arith.cmpf ogt, %83, %86 : vector<1x1x1xf32>
    %cst_38 = arith.constant 1.000000e+00 : f32
    %88 = vector.broadcast %cst_38 : f32 to vector<1x1x1xf32>
    %89 = arith.maximumf %83, %88 : vector<1x1x1xf32>
    %90 = arith.divf %85, %89 : vector<1x1x1xf32>
    %cst_39 = arith.constant 0.000000e+00 : f32
    %91 = vector.broadcast %cst_39 : f32 to vector<1x1x1xf32>
    %92 = arith.select %87, %90, %91 : vector<1x1x1xi1>, vector<1x1x1xf32>
    %c0_40 = arith.constant 0 : index
    %c0_41 = arith.constant 0 : index
    %c0_42 = arith.constant 0 : index
    %93 = vector.load %arg6[%c0_40, %c0_41, %c0_42] : memref<1x1x1xf32, #tpu.memory_space<vmem>>, vector<1x1x1xf32>
    tpu.vector_store %arg6[%c0_40, %c0_41, %c0_42], %92 {strides = array<i32>} : memref<1x1x1xf32, #tpu.memory_space<vmem>>, vector<1x1x1xf32>,
    return
  }
  func.func @transform_0(%arg0: i32) -> (i32, i32, i32) {
    %c0_i32 = arith.constant 0 : i32
    %c0_i32_0 = arith.constant 0 : i32
    %c0_i32_1 = arith.constant 0 : i32
    return %arg0, %c0_i32, %c0_i32_0 : i32, i32, i32
  }
  func.func @transform_1(%arg0: i32) -> (i32, i32, i32) {
    %c0_i32 = arith.constant 0 : i32
    %c0_i32_0 = arith.constant 0 : i32
    %c0_i32_1 = arith.constant 0 : i32
    return %arg0, %c0_i32, %c0_i32_0 : i32, i32, i32
  }
  func.func @transform_2(%arg0: i32) -> (i32, i32, i32) {
    %c0_i32 = arith.constant 0 : i32
    %c0_i32_0 = arith.constant 0 : i32
    %c0_i32_1 = arith.constant 0 : i32
    return %arg0, %c0_i32, %c0_i32_0 : i32, i32, i32
  }
  func.func @transform_3(%arg0: i32) -> (i32, i32, i32) {
    %c0_i32 = arith.constant 0 : i32
    %c0_i32_0 = arith.constant 0 : i32
    %c0_i32_1 = arith.constant 0 : i32
    return %arg0, %c0_i32, %c0_i32_0 : i32, i32, i32
  }
  func.func @transform_4(%arg0: i32) -> (i32, i32, i32) {
    %c0_i32 = arith.constant 0 : i32
    %c0_i32_0 = arith.constant 0 : i32
    %c0_i32_1 = arith.constant 0 : i32
    return %arg0, %c0_i32, %c0_i32_0 : i32, i32, i32
  }
  func.func @transform_5(%arg0: i32) -> (i32, i32, i32) {
    %c0_i32 = arith.constant 0 : i32
    %c0_i32_0 = arith.constant 0 : i32
    %c0_i32_1 = arith.constant 0 : i32
    return %arg0, %c0_i32, %c0_i32_0 : i32, i32, i32
  }
}

</mosaic_0001>

<bundles_post_ra>
// kernel: tpu_custom_call.1
= control target key start
LH: loop header
LB: loop body
LE: loop exit
PB: predicated region body
PF: predicated region fallthrough
CT: control target
= control target key end

     0   :  { %10 = vsyncpa [#allocation3], 0  ;;  %s1464_s0 = inlined_call_operand.vmem [shape: s32[2,1,1], index: 0, kind: input, shape index: {}]   ;;  %s1465_s1 = inlined_call_operand.vmem [shape: s32[2,1,1], index: 1, kind: input, shape index: {}]   ;;  %s1466_s2 = inlined_call_operand.hbm [shape: f32[2,8,32], index: 2, kind: input, shape index: {}]   ;;  %s1467_s3 = inlined_call_operand.vmem [shape: f32[2,8,32], index: 3, kind: input, shape index: {}]   ;;  %s1468_s4 = inlined_call_operand.hbm [shape: f32[2,8,8], index: 4, kind: input, shape index: {}]   ;;  %s1469_s5 = inlined_call_operand.vmem [shape: f32[2,1,1], index: 5, kind: output, shape index: {}]  }
   0x1   :  { %12 = vsyncpa [#allocation3 + $0x1], 0 }
   0x2   :  { %13 = vsyncpa [#allocation5], 0 }
   0x3   :  { %15 = vsyncpa [#allocation5 + $0x1], 0  ;;  %s1265_s18 = smov 0   ;;  %s1267_s19 = smov 0  }
   0x4   :  { %s1269_s20 = smov 0   ;;  %s1271_s21 = smov 0  }
   0x5 LB: > { %s1284_s22 = sadd.s32 4294967295, %s1228_s21   ;;  %s1287_s23 = sadd.s32 1, %s1228_s21   ;;  %s1228_s21 = sphi %s1271_s21, %s1481_s21   ;;  %s1224_s20 = sphi %s1269_s20, %s1480_s20   ;;  %s1220_s19 = sphi %s1267_s19, %s1479_s19   ;;  %s1216_s18 = sphi %s1265_s18, %s1478_s18  }
   0x6   : > { %s77_s24 = ssub.s32 %s1228_s21, %s1287_s23  ;;  %s80_s25 = sadd.s32 1, %s1224_s20 }
   0x7   : > { %p78_p0 = scmp.eq.s32.totalorder %s77_s24, 0  ;;  %p87_p1 = scmp.ne.s32.totalorder %s1224_s20, %s1220_s19 }
   0x8   : > { %p88_p2 = scmp.eq.s32.totalorder %s1228_s21, 0  ;;  %p93_p3 = scmp.ne.s32.totalorder %s1220_s19, %s1216_s18 }
   0x9   : > { %s1297_s26 = scalar_select %p78_p0, %s1224_s20, %s80_s25  }
   0xa   : > { %p89_p4 = por %p88_p2, %p87_p1  ;;  %p94_p5 = scmp.eq.s32.totalorder %s1284_s22, 0 }
   0xb   : > { %p1080_p6 = scmp.lt.s32.totalorder %s1228_s21, 2  ;;  %s1306_s28 = sand.u32 1, %s1224_s20  }
   0xc   : > { %p1301_p7 = por %p94_p5, %p93_p3  ;;  %s1004_s29 = sshll.u32 %s1306_s28, 3 }
   0xd   : > { %s1005_s30 = sshll.u32 %s1228_s21, 7  ;;  %s211_s9 = scalar_lea.vmem [#allocation2], %s1004_s29 }
   0xe   : > { %s1471_s27 = scalar_select %p1301_p7, 1, 0 }
   0xf   : > { %s1315_s8 = scalar_lea.hbm %s1466_s2, %s1005_s30  ;;  %s218_s10 = sshll.u32 %s211_s9, 4  ;;  %s1319_s10 = int_to_ptr.vmem [resolvable:$true] %s218_s10 }
  0x10   : > { %p1321_p8 = pnand %p1080_p6, %p89_p4  ;;  %s208_s12 = scalar_lea.sflag [#allocation3], %s1306_s28 }
  0x11   : > { %s1130_s13 = scalar_lea.hbm %s1315_s8, 128  ;;  %s1135_s16 = scalar_lea.hbm %s1466_s2, 256 }
  0x12   : > { %p1131_p11 = scmp.ne.s32.totalorder %s1315_s8, %s1130_s13  ;;  %p1132_p12 = pneg %p1321_p8 }
  0x13   : > { %p1136_p1 = scmp.lt.u32.totalorder %s1315_s8, %s1466_s2  ;;  %p1137_p2 = scmp.lt.u32.totalorder %s1135_s16, %s1130_s13 }
  0x14   : > { %p1133_p13 = pnand %p1132_p12, %p1131_p11  ;;  %p1139_p4 = scmp.lt.u32.totalorder %s1130_s13, %s1315_s8 }
  0x15   : > { %p1138_p3 = por %p1137_p2, %p1136_p1 }
  0x16   : > { %p1134_p0 = pneg %p1133_p13 }
  0x17   : > { %p1140_p5 = por %p1139_p4, %p1138_p3 }
  0x19   : > { %p1141_p6 = pnand %p1140_p5, %p1134_p0 }
  0x1b   : > { %1144 = shalt.err (!%p1141_p6)
}
  0x1c   : > { %s1145_s24 = scalar_lea.vmem %s1319_s10, 128  ;;  %s1230_s25 = smov [#allocation2]  }
  0x1d   : > { %p1146_p11 = scmp.ne.s32.totalorder %s1319_s10, %s1145_s24  ;;  %s1150_s6 = sshll.u32 %s1230_s25, 4  ;;  %s1151_s6 = int_to_ptr.vmem [resolvable:$false] %s1150_s6 }
  0x1e   : > { %s1152_s7 = scalar_lea.vmem %s1151_s6, 256  ;;  %p1153_p10 = scmp.lt.s32.totalorder %s1319_s10, %s1151_s6 }
  0x1f   : > { %p1148_p13 = pnand %p1146_p11, %p1132_p12  ;;  %p1154_p1 = scmp.lt.s32.totalorder %s1152_s7, %s1145_s24 }
  0x21   : > { %p1149_p9 = pneg %p1148_p13  ;;  %p1155_p2 = por %p1154_p1, %p1153_p10 }
  0x23   : > { %p1156_p3 = pnand %p1155_p2, %p1149_p9 }
  0x25   : > { %1159 = shalt.err (!%p1156_p3)
}
  0x26   : > { %1076 = dma.hbm_to_vmem [thread:$0]  (!%p1321_p8), %s1315_s8, 128, %s1319_s10, %s208_s12  }
  0x27   : > { %p1473_p0 = scmp.lt.s32.totalorder %s1228_s21, 3  ;;  %p1474_p4 = scmp.ge.s32.totalorder %s1228_s21, 1 }
  0x28   : > { %s1366_s15 = scalar_lea.hbm %s1468_s4, %s1005_s30  ;;  %s236_s16 = scalar_lea.vmem [#allocation4], %s1004_s29 }
  0x29   : > { %p1357_p5 = pnand %p1474_p4, %p1473_p0  ;;  %s243_s17 = sshll.u32 %s236_s16, 4  ;;  %s244_s17 = int_to_ptr.vmem [resolvable:$true] %s243_s17 }
  0x2a   : > { %s233_s8 = scalar_lea.sflag [#allocation5], %s1306_s28  ;;  %s1160_s10 = scalar_lea.hbm %s1366_s15, 128 }
  0x2b   : > { %s1475_s9 = scalar_select %p1357_p5, 1, 0 }
  0x2c   : > { %p1161_p9 = scmp.ne.s32.totalorder %s1366_s15, %s1160_s10  ;;  %s1165_s30 = scalar_lea.hbm %s1468_s4, 256 }
  0x2d   : > { %p1166_p11 = scmp.lt.u32.totalorder %s1366_s15, %s1468_s4  ;;  %p1167_p13 = scmp.lt.u32.totalorder %s1165_s30, %s1160_s10 }
  0x2e   : > { %p1163_p10 = pnand %p1161_p9, %p1132_p12  ;;  %p1169_p2 = scmp.lt.u32.totalorder %s1160_s10, %s1366_s15 }
  0x2f   : > { %p1168_p1 = por %p1167_p13, %p1166_p11 }
  0x30   : > { %p1164_p6 = pneg %p1163_p10 }
  0x31   : > { %p1170_p3 = por %p1169_p2, %p1168_p1 }
  0x33   : > { %p1171_p0 = pnand %p1170_p3, %p1164_p6 }
  0x35   : > { %1174 = shalt.err (!%p1171_p0)
}
  0x36   : > { %s1175_s28 = scalar_lea.vmem %s244_s17, 128  ;;  %s1231_s29 = smov [#allocation4]  }
  0x37   : > { %p1176_p4 = scmp.ne.s32.totalorder %s244_s17, %s1175_s28  ;;  %s1180_s25 = sshll.u32 %s1231_s29, 4  ;;  %s1181_s25 = int_to_ptr.vmem [resolvable:$false] %s1180_s25 }
  0x38   : > { %s1182_s6 = scalar_lea.vmem %s1181_s25, 256  ;;  %p1183_p7 = scmp.lt.s32.totalorder %s244_s17, %s1181_s25 }
  0x39   : > { %p1178_p9 = pnand %p1176_p4, %p1132_p12  ;;  %p1184_p5 = scmp.lt.s32.totalorder %s1182_s6, %s1175_s28 }
  0x3b   : > { %p1179_p10 = pneg %p1178_p9  ;;  %p1185_p11 = por %p1184_p5, %p1183_p7 }
  0x3d   : > { %p1186_p13 = pnand %p1185_p11, %p1179_p10 }
  0x3f   : > { %1189 = shalt.err (!%p1186_p13)
}
  0x40   : > { %1079 = dma.hbm_to_vmem [thread:$0]  (!%p1321_p8), %s1366_s15, 128, %s244_s17, %s233_s8  }
  0x41   : > { %p1476_p6 = scmp.ne.s32.totalorder %s1475_s9, 0 }
  0x42   : > { %s254_s7 = sand.u32 (!%p1476_p6), 1, %s1220_s19   ;;  %p1477_p12 = scmp.ne.s32.totalorder (!%p1476_p6), %s1471_s27, 0 }
  0x43   : > { %252 = sbr.rel (%p1476_p6) target bundleno = 852 (0x354), region = 40  ;;  %s1009_s13 = sshll.u32 (!%p1476_p6), %s254_s7, 3 }
  0x44   : > { %s255_s14 = scalar_lea.sflag (!%p1476_p6), [#allocation3], %s254_s7  ;;  %s258_s16 = scalar_lea.vmem (!%p1476_p6), [#allocation2], %s1009_s13 }
  0x4a   : > { %1207 = dma.done.wait (%p1477_p12), %s255_s14, 128  }
  0x4b   : > { %1209 = vsyncadd (%p1477_p12), %s255_s14, 4294967168  ;;  %s264_s10 = scalar_lea.sflag [#allocation5], %s254_s7  ;;  %s1397_s21 = scalar_lea.vmem [#allocation4], %s1009_s13 }
  0x4c   : > { %1211 = dma.done.wait (%p1477_p12), %s264_s10, 128  }
  0x4d   : > { %1213 = vsyncadd (%p1477_p12), %s264_s10, 4294967168  ;;  %p307_p7 = scmp.lt.s32.totalorder %s1284_s22, 1  ;;  %v320_v0 = vld [vmem:[%s258_s16] sm:$0xff]  ;;  %vm324_vm0 = vcmask 261120   ;;  %v1232_v6 = vmov 0.0   ;;  %vm1233_vm1 = vmmov 0   ;;  %v807_v31 = vlaneseq }
  0x4e   : > { %v323_v2 = vmul.f32 %v320_v0, %v320_v0  ;;  %1030 = vmatprep.subr.mxu1 %v1232_v6  ;;  %1045 = vmatprep.subr.mxu0 %v1232_v6  ;;  %v1234_v7 = vmov 0   ;;  %v322_v42 = vld [vmem:[%s1397_s21] sm:$0xff]  ;;  %vm831_vm5 = vcmask 64512   ;;  %vm887_vm11 = vcmask 0  }
  0x4f   : > { %s1483_s22 = smov (!%p307_p7, %s1284_s22), 1  ;;  %1047 = vmatprep.mubr.msk.f32.mxu0 %vm1233_vm1, %v1232_v6  ;;  %1032 = vmatprep.mubr.msk.f32.mxu1 %vm1233_vm1, %v1232_v6  ;;  %v808_v32 = vshrl.u32 %v807_v31, 7  ;;  %v810_v33 = vand.u32 127, %v807_v31 }
  0x50   : > { %s1011_s11 = sshll.u32 %s1483_s22, 3  ;;  %v325_v4 = vsel %vm324_vm0, %v323_v2, 0.0  ;;  %s309_s12 = scalar_lea.vmem %s1464_s0, %s1483_s22  ;;  %1116 = vset.pattern.permute.xlu1 %v1234_v7  ;;  %1117 = vset.pattern.permute.xlu0 %v1234_v7 }
  0x51   : > { %s316_s17 = scalar_lea.vmem %s1467_s3, %s1011_s11  ;;  %326 = vadd.xlane.f32.xlu0 %v325_v4  ;;  %s312_s24 = scalar_lea.vmem %s1465_s1, %s1483_s22  ;;  %v1013_v8 = vld [vmem:[%s309_s12] ss:$0 sm:$0xff] }
  0x52   : > { %v321_v1 = vld [vmem:[%s316_s17] sm:$0xff]  ;;  %817 = vperm.xlu1 %1116, %v1013_v8   ;;  %s319_s25 = scalar_lea.vmem %s1469_s5, %s1483_s22 }
  0x53   : > { %v330_v3 = vmul.f32 %v321_v1, %v321_v1  ;;  %v1014_v9 = vld [vmem:[%s312_s24] ss:$0 sm:$0xff] }
  0x55   : > { %v331_v5 = vsel %vm324_vm0, %v330_v3, 0.0 }
  0x56   : > { %332 = vadd.xlane.f32.xlu0 %v331_v5  ;;  %826 = vperm.xlu1 %1116, %v1014_v9  }
  0xd1   : > { %v818_v30 = vpop.permute.xlu1 %817 }
  0xd2   : > { %vm819_vm2 = vcmp.lt.s32.totalorder %v808_v32, %v818_v30 }
  0xd5   : > { %v827_v35 = vpop.permute.xlu1 %826 }
  0xd6   : > { %vm828_vm3 = vcmp.lt.s32.totalorder %v810_v33, %v827_v35 }
  0xd7   : > { %vm829_vm4 = vmand %vm819_vm2, %vm828_vm3 }
  0xd8   : > { %v830_v44 = vsel %vm829_vm4, %v322_v42, 0.0 }
  0xd9   : > { %v832_v46 = vsel %vm831_vm5, %v830_v44, 0.0 }
  0xda   : > { %v836_v47 = vrot.slane %v832_v46, 4 }
  0xdc   : > { %v837_v48 = vadd.f32 %v836_v47, %v832_v46 }
  0xde   : > { %v327_v10 = vpop.xlane.xlu0 %326  ;;  %v838_v51 = vrot.slane %v837_v48, 2 }
  0xdf   : > { %v328_v11 = vmax.f32 %v327_v10, 1e-24 }
  0xe0   : > { %v839_v57 = vadd.f32 %v838_v51, %v837_v48 }
  0xe1   : > { %1118 = vrsqrt.f32 %v328_v11 }
  0xe2   : > { %v840_v61 = vrot.slane %v839_v57, 1 }
  0xe3   : > { %v333_v12 = vpop.xlane.xlu0 %332 }
  0xe4   : > { %v334_v13 = vmax.f32 %v333_v12, 1e-24 }
  0xe6   : > { %1120 = vrsqrt.f32 %v334_v13 }
  0xeb   : > { %v1119_v14 = vpop.eup %1118 }
  0xec   : > { %v336_v15 = vmul.f32 %v1119_v14, %v320_v0  ;;  %v841_v0 = vadd.f32 %v840_v61, %v839_v57 }
  0xee   : > { %v339_v16 = vsel %vm324_vm0, %v336_v15, 0  ;;  %vm842_vm9 = vcmp.gt.f32.partialorder %v841_v0, 0.0 }
  0xef   : > { %v410_v18 = vand.u32 4294901760, %v339_v16 }
  0xf0   : > { %v1121_v17 = vpop.eup %1120 }
  0xf1   : > { %v337_v19 = vmul.f32 %v1121_v17, %v321_v1  ;;  %v411_v20 = vsub.f32 %v339_v16, %v410_v18 }
  0xf3   : > { %v342_v21 = vsel %vm324_vm0, %v337_v19, 0  ;;  %v412_v23 = vand.u32 4294901760, %v411_v20 }
  0xf4   : > { %v345_v22 = vand.u32 4294901760, %v342_v21 }
  0xf5   : > { %v413_v25 = vsub.f32 %v411_v20, %v412_v23 }
  0xf6   : > { %1031 = vmatpush3.xpose.msra.mxu1 %v345_v22  ;;  %v422_v24 = vsub.f32 %v342_v21, %v345_v22  ;;  %1046 = vmatpush3.xpose.msra.mxu0 %v345_v22 }
  0xf7   : > { %1050 = vmatprep.subr.mxu0 %v1232_v6  ;;  %1035 = vmatprep.subr.mxu1 %v1232_v6  ;;  %v414_v26 = vand.u32 4294901760, %v413_v25 }
  0xf8   : > { %v423_v27 = vand.u32 4294901760, %v422_v24 }
  0xf9   : > { %1048 = vmatmul.mubr.f32.vlgmr.msra.gmra.mrb[0].mxu0 %v412_v23  ;;  %1033 = vmatmul.mubr.f32.vlgmr.msra.gmra.mrb[0].mxu1 %v414_v26 }
  0xfa   : > { %1051 = vmatpush3.xpose.msra.mxu0 %v423_v27  ;;  %v424_v28 = vsub.f32 %v422_v24, %v423_v27  ;;  %1052 = vmatprep.mubr.msk.f32.mxu0 %vm1233_vm1, %v1232_v6 }
  0xfb   : > { %1055 = vmatprep.subr.mxu0 %v1232_v6  ;;  %1037 = vmatprep.mubr.msk.f32.mxu1 %vm1233_vm1, %v1232_v6 }
  0xfc   : > { %v425_v29 = vand.u32 4294901760, %v424_v28 }
  0xfe   : > { %1036 = vmatpush3.xpose.msra.mxu1 %v425_v29 }
  0xff   : > { %1040 = vmatprep.subr.mxu1 %v1232_v6 }
 0x101   : > { %1053 = vmatmul.mubr.f32.vlgmr.msra.gmra.mrb[0].mxu0 %v410_v18  ;;  %1038 = vmatmul.mubr.f32.vlgmr.msra.gmra.mrb[0].mxu1 %v410_v18 }
 0x102   : > { %1056 = vmatpush3.xpose.msra.mxu0 %v345_v22  ;;  %1041 = vmatpush3.xpose.msra.mxu1 %v422_v24 }
 0x103   : > { %1057 = vmatprep.mubr.msk.f32.mxu0 %vm1233_vm1, %v1232_v6  ;;  %1042 = vmatprep.mubr.msk.f32.mxu1 %vm1233_vm1, %v1232_v6 }
 0x109   : > { %1058 = vmatmul.mubr.f32.vlgmr.msra.gmra.mrb[0].mxu0 %v410_v18  ;;  %1043 = vmatmul.mubr.f32.vlgmr.msra.gmra.mrb[0].mxu1 %v411_v20 }
 0x1dc   : > { %v786_v34 = vpop.f32.mrb[0].mxu0  ;;  %v566_v36 = vpop.f32.mrb[0].mxu1 }
 0x1dd   : > { %v1059_v37 = vpop.f32.mrb[1].mxu0  ;;  %v1060_v38 = vadd.f32 %v786_v34, %v566_v36  ;;  %v1044_v39 = vpop.f32.mrb[1].mxu1 }
 0x1df   : > { %v790_v40 = vmul.f32 %v1060_v38, %v1060_v38  ;;  %v801_v55 = vmul.f32 0.87758255, %v1060_v38  ;;  %v1012_v59 = vadd.f32 -0.23971277, %v1060_v38  ;;  %vm804_vm8 = vcmp.gt.f32.partialorder %v1060_v38, -0.87758255 }
 0x1e1   : > { %v791_v41 = vsub.f32 1.0, %v790_v40 }
 0x1e3   : > { %v792_v43 = vmax.f32 %v791_v41, 0.0 }
 0x1e5   : > { %v793_v45 = vmin.f32 %v792_v43, 1.0 }
 0x1e7   : > { %1122 = vrsqrt.f32 %v793_v45  ;;  %vm796_vm6 = vcmp.eq.f32.partialorder %v793_v45, inf  ;;  %v799_v52 = vand.u32 2147483648, %v793_v45  ;;  %vm798_vm7 = vcmp.eq.f32.partialorder %v793_v45, 0.0 }
 0x1f1   : > { %v1123_v49 = vpop.eup %1122 }
 0x1f2   : > { %v795_v50 = vmul.f32 %v1123_v49, %v793_v45 }
 0x1f4   : > { %v797_v53 = vsel %vm796_vm6, %v793_v45, %v795_v50 }
 0x1f5   : > { %v800_v54 = vsel %vm798_vm7, %v799_v52, %v797_v53 }
 0x1f6   : > { %v802_v56 = vmul.f32 0.47942555, %v800_v54 }
 0x1f8   : > { %v803_v58 = vsub.f32 %v801_v55, %v802_v56 }
 0x1fa   : > { %v806_v60 = vsel %vm804_vm8, %v803_v58, %v1012_v59 }
 0x1fb   : > { %v843_v62 = vsub.f32 %v806_v60, %v1060_v38 }
 0x1fd   : > { %v844_v63 = vmul.f32 %v843_v62, %v830_v44 }
 0x1ff   : > { %v845_v1 = vadd.f32 %v1060_v38, %v844_v63 }
 0x201   : > { %v846_v2 = vmul.f32 10.0, %v845_v1 }
 0x203   : > { %v849_v3 = vsel %vm842_vm9, %v846_v2, -1e+30  ;;  %v862_v5 = vmul.f32 %v846_v2, %v830_v44 }
 0x204   : > { %v850_v4 = vsel %vm831_vm5, %v849_v3, -inf }
 0x205   : > { %851 = vmax.xlane.f32.xlu0 %v850_v4  ;;  %v863_v7 = vsel %vm831_vm5, %v862_v5, 0.0 }
 0x209   : > { %833 = vadd.xlane.f32.xlu0 %v832_v46 }
 0x20d   : > { %864 = vadd.xlane.f32.xlu0 %v863_v7 }
 0x292   : > { %v852_v8 = vpop.xlane.xlu0 %851 }
 0x293   : > { %v853_v9 = vsub.f32 %v849_v3, %v852_v8 }
 0x295   : > { %v854_v10 = vmul.f32 1.442695, %v853_v9 }
 0x296   : > { %v834_v13 = vpop.xlane.xlu0 %833 }
 0x297   : > { %1124 = vpow2.f32 %v854_v10  ;;  %vm835_vm10 = vcmp.gt.f32.partialorder %v834_v13, 0.0 }
 0x298   : > { %v1015_v14 = vsel %vm835_vm10, 1.0, %v1232_v6 }
 0x299   : > { %v870_v15 = vrot.slane %v1015_v14, 4 }
 0x29a   : > { %v865_v25 = vpop.xlane.xlu0 %864 }
 0x29b   : > { %v871_v16 = vadd.f32 %v1015_v14, %v870_v15 }
 0x29d   : > { %v872_v18 = vrot.slane %v871_v16, 2 }
 0x29f   : > { %v873_v19 = vadd.f32 %v872_v18, %v871_v16 }
 0x2a1   : > { %v1125_v11 = vpop.eup %1124  ;;  %v874_v20 = vrot.slane %v873_v19, 1 }
 0x2a2   : > { %v856_v12 = vsel %vm831_vm5, %v1125_v11, 0.0 }
 0x2a3   : > { %857 = vadd.xlane.f32.xlu1 %v856_v12  ;;  %v875_v23 = vadd.f32 %v874_v20, %v873_v19 }
 0x2a5   : > { %v883_v27 = vmax.f32 %v875_v23, 1.0  ;;  %vm882_vm12 = vcmp.gt.f32.partialorder %v875_v23, 0.0 }
 0x330   : > { %v858_v17 = vpop.xlane.xlu1 %857 }
 0x331   : > { %1126 = vlog2.f32 %v858_v17 }
 0x332   : > { %1128 = vrcp.f32 %v883_v27 }
 0x33b   : > { %v1127_v21 = vpop.eup %1126 }
 0x33c   : > { %v860_v22 = vmul.f32 0.6931472, %v1127_v21  ;;  %v1129_v34 = vpop.eup %1128 }
 0x33e   : > { %v861_v24 = vadd.f32 %v860_v22, %v852_v8 }
 0x340   : > { %v868_v26 = vsub.f32 %v861_v24, %v865_v25 }
 0x342   : > { %v869_v28 = vmul.f32 %v1015_v14, %v868_v26 }
 0x344   : > { %v876_v29 = vrot.slane %v869_v28, 4 }
 0x346   : > { %v877_v30 = vadd.f32 %v876_v29, %v869_v28 }
 0x348   : > { %v878_v6 = vrot.slane %v877_v30, 2 }
 0x34a   : > { %v879_v31 = vadd.f32 %v878_v6, %v877_v30 }
 0x34c   : > { %v880_v32 = vrot.slane %v879_v31, 1 }
 0x34e   : > { %v881_v33 = vadd.f32 %v880_v32, %v879_v31 }
 0x350   : > { %v885_v35 = vmul.f32 %v1129_v34, %v881_v33 }
 0x352   : > { %v886_v36 = vsel %vm882_vm12, %v885_v35, 0.0 }
 0x353   : > { %888 = vst.msk [vmem:[%s319_s25] sm:$0x1] %vm887_vm11, %v886_v36 }
 0x354 PF: > { %p18_p8 = scmp.ge.s32.totalorder %s1287_s23, 4   ;;  %s1478_s18 = smov %s1220_s19 }
 0x355   : > { %s1479_s19 = smov %s1224_s20  ;;  %s1480_s20 = smov %s1297_s26 }
 0x356   : > { %s1481_s21 = smov %s1287_s23  ;;  %20 = sbr.rel (!%p18_p8) target bundleno = 5 (0x5), region = 102 }
 0x35d   :  { %906 = vsyncpa [#allocation3], 1 }
 0x35e   :  { %908 = vsyncpa [#allocation3 + $0x1], 1 }
 0x35f   :  { %909 = vsyncpa [#allocation5], 1 }
 0x360   :  { %911 = vsyncpa [#allocation5 + $0x1], 1 }

</bundles_post_ra>
